<compile_context>
chip_gen: v6e
topology: v6e:2x2x1
jax: 0.10.0
libtpu: 0.0.40
codegen_flags: <defaults>
</compile_context>

<pallas_src>
import jax
import jax.numpy as jnp
from jax.experimental import pallas as pl
from jax.experimental.pallas import tpu as pltpu

LANE = 128                      # lane width of a vreg
N_IN = 4                        # every (folded) layer has 4 inputs
LAYER_OUTS = (4, 4, 4, 4, 1)    # folded layers: 4x relu layers + final sigmoid layer
STRIDE = N_IN + 1               # packed row per output neuron: [w0, w1, w2, w3, bias]
N_PARAMS = sum(n * STRIDE for n in LAYER_OUTS)   # 85

# f32 blocks: double-buffered 2*(4 MiB in + 1 MiB out) ~= 10 MiB at 2048 rows -> fits v5e's
# 16 MiB default scoped VMEM; well inside v6e/v7x 32 MiB.
MAX_TILE_ROWS = 2048
# Keep >= this many grid steps for big batches so v7x's 2 TensorCores both get work.
MIN_GRID_STEPS = 4


def make_mlp_kernel(compute_dtype):
    """p_ref: SMEM (85,) f32 packed params; x_ref: VMEM (4, TR, 128) f32; o_ref: (TR, 128) f32."""
    def mlp_kernel(p_ref, x_ref, o_ref):
        # Feature-major activation rows; batch fills sublanes+lanes of each row.
        h = [x_ref[i].astype(compute_dtype) for i in range(N_IN)]   # 4 arrays (TR, 128)
        base = 0
        for li, n_out in enumerate(LAYER_OUTS):
            nxt = []
            for j in range(n_out):
                off = base + j * STRIDE
                # scalar-from-SMEM * vector (VPU FMA chain); scalars cast to the compute dtype
                acc = h[0] * p_ref[off + 0].astype(compute_dtype)
                for i in range(1, N_IN):
                    acc = acc + h[i] * p_ref[off + i].astype(compute_dtype)
                acc = acc + p_ref[off + N_IN].astype(compute_dtype)     # bias
                nxt.append(acc)
            base += n_out * STRIDE
            if li < len(LAYER_OUTS) - 1:
                h = [jnp.maximum(a, 0.0) for a in nxt]                  # ReLU (VPU)
            else:
                h = nxt
        # EUP logistic in f32, lane-dense (TR, 128) f32 store.
        o_ref[...] = jax.nn.sigmoid(h[0].astype(jnp.float32))
    return mlp_kernel


def fold_params(params):
    """Fold the two activation-free Linear pairs. params: 7 tuples (W[in,out], b[out])."""
    (w1, b1), (w2, b2), (w3, b3), (w4, b4), (w5, b5), (w6, b6), (w7, b7) = params
    return [
        (w1 @ w2, b1 @ w2 + b2),   # linear1 ∘ fc_relu1.fc1   (then ReLU)
        (w3, b3),                  # fc_relu1.fc2             (then ReLU)
        (w4 @ w5, b4 @ w5 + b5),   # linear2 ∘ fc_relu2.fc1   (then ReLU)
        (w6, b6),                  # fc_relu2.fc2             (then ReLU)
        (w7, b7),                  # linear3                  (then sigmoid)
    ]


def pack_params(folded):
    """Flat f32 buffer; per output neuron j of each layer: [W[0,j],..,W[3,j], b[j]]."""
    rows = []
    for w, b in folded:
        wt_b = jnp.concatenate([w.T, b.reshape(-1, 1)], axis=1)   # [out, in+1]
        rows.append(wt_b.reshape(-1))
    return jnp.concatenate(rows).astype(jnp.float32)              # (85,)


def _pick_tile_rows(rows):
    """Big tiles (amortize ~600-cycle per-step overhead) but >= MIN_GRID_STEPS steps when possible."""
    if rows <= 8:
        return rows                               # single step; block == full array
    target = -(-rows // MIN_GRID_STEPS)           # aim for >= MIN_GRID_STEPS grid steps
    target = -(-target // 8) * 8                  # sublane-aligned
    return max(8, min(MAX_TILE_ROWS, target))


def _forward(x, params, compute_dtype_name):
    compute_dtype = jnp.dtype(compute_dtype_name)
    batch = x.shape[0]
    packed = pack_params(fold_params(params))                 # (85,) f32, folded in f32

    rows = max(1, -(-batch // LANE))                          # ceil(batch / 128)
    tile_rows = _pick_tile_rows(rows)
    n_steps = -(-rows // tile_rows)
    rows_p = n_steps * tile_rows
    batch_p = rows_p * LANE

    # Feature-major relayout; kept inside this jitted function so XLA fuses
    # transpose+pad+reshape into a single HBM copy before the kernel.
    x_t = jnp.transpose(x.astype(jnp.float32))                # (4, batch)
    x_t = jnp.pad(x_t, ((0, 0), (0, batch_p - batch)))        # (4, batch_p)
    x3 = x_t.reshape(N_IN, rows_p, LANE)

    cost = pl.CostEstimate(
        flops=152 * batch_p,              # folded net: 4x(4->4 FMA+ReLU) + (4->1) per element
        transcendentals=batch_p,          # one sigmoid per element
        bytes_accessed=20 * batch_p + N_PARAMS * 4,
    )

    out3 = pl.pallas_call(
        make_mlp_kernel(compute_dtype),
        out_shape=jax.ShapeDtypeStruct((rows_p, LANE), jnp.float32),
        grid=(n_steps,),
        in_specs=[
            # Packed params: grid-invariant SMEM residency (equivalent to scalar prefetch).
            pl.BlockSpec(memory_space=pltpu.MemorySpace.SMEM),
            pl.BlockSpec((N_IN, tile_rows, LANE), lambda i: (0, i, 0)),     # x tile
        ],
        out_specs=pl.BlockSpec((tile_rows, LANE), lambda i: (i, 0)),
        compiler_params=pltpu.CompilerParams(dimension_semantics=("parallel",)),
        cost_estimate=cost,
    )(packed, x3)

    return out3.reshape(batch_p)[:batch].reshape(batch, 1)


_forward_jit = jax.jit(_forward, static_argnums=(2,))

_COMPUTE_DTYPE = None


def _select_compute_dtype():
    """f32 on v5e/unknown; bf16 on v6e/v7x if a tiny probe compile succeeds (else fall back)."""
    global _COMPUTE_DTYPE
    if _COMPUTE_DTYPE is not None:
        return _COMPUTE_DTYPE
    dtype = "float32"
    try:
        dev = jax.devices()[0]
        kind = dev.device_kind.lower()
        if dev.platform == "tpu" and ("v6" in kind or "v7" in kind or "7x" in kind):
            probe_x = jnp.ones((LANE, N_IN), jnp.float32)
            probe_params = [
                (jnp.zeros((din, dout), jnp.float32), jnp.zeros((dout,), jnp.float32))
                for din, dout in [(4, 4)] * 6 + [(4, 1)]
            ]
            jax.block_until_ready(_forward_jit(probe_x, probe_params, "bfloat16"))
            dtype = "bfloat16"
    except Exception:
        dtype = "float32"
    _COMPUTE_DTYPE = dtype
    return dtype


def orig_module_forward(x, params, compute_dtype=None):
    """x: [batch, 4] float32; params: list of 7 (W[in,out], b[out]) arrays. Returns [batch, 1] f32."""
    name = _select_compute_dtype() if compute_dtype is None else jnp.dtype(compute_dtype).name
    return _forward_jit(x, params, name)


def init_params(key):
    """Deterministic init. 7 linear layers: six 4->4, one 4->1 (nn.Linear-style bounds)."""
    dims = [(4, 4), (4, 4), (4, 4), (4, 4), (4, 4), (4, 4), (4, 1)]
    params = []
    for din, dout in dims:
        kw, kb, key = jax.random.split(key, 3)
        bound = 1.0 / jnp.sqrt(din)
        w = jax.random.uniform(kw, (din, dout), jnp.float32, -bound, bound)
        b = jax.random.uniform(kb, (dout,), jnp.float32, -bound, bound)
        params.append((w, b))
    return params


def _reference(x, params):
    """Pure-JAX reference of the ORIGINAL (unfolded) 7-layer module."""
    h = x
    for i, (w, b) in enumerate(params):
        h = h @ w + b
        if i in (1, 2, 4, 5):            # ReLUs inside the FcRelu blocks
            h = jnp.maximum(h, 0.0)
    return jax.nn.sigmoid(h)


if __name__ == "__main__":
    key = jax.random.PRNGKey(0)
    kx, kp = jax.random.split(key)
    batch = 8
    x = jax.random.normal(kx, (batch, 4), dtype=jnp.float32)
    params = init_params(kp)

    out = jax.block_until_ready(orig_module_forward(x, params))

    used = _select_compute_dtype()
    atol = 1e-5 if used == "float32" else 5e-2   # bf16 chain needs a looser tolerance

    ref = _reference(x, params)
    assert out.shape == (batch, 1)
    assert jnp.allclose(out, ref, atol=atol), "mismatch vs JAX reference (batch=8)"

    # Also exercise the multi-step pipelined grid path (rows=16 -> tile_rows=8, grid=(2,)).
    x2 = jax.random.normal(jax.random.PRNGKey(1), (2048, 4), dtype=jnp.float32)
    out2 = jax.block_until_ready(orig_module_forward(x2, params))
    assert out2.shape == (2048, 1)
    assert jnp.allclose(out2, _reference(x2, params), atol=atol), "mismatch vs JAX reference (batch=2048)"

    print("KERNEL_OK")
</pallas_src>

<mosaic_0001>
module attributes {stable_mosaic.version = 11 : i64} {
  func.func @mlp_kernel(%arg0: i32, %arg1: memref<85xf32, #tpu.memory_space<smem>>, %arg2: memref<4x1x128xf32, #tpu.memory_space<vmem>>, %arg3: memref<1x128xf32, #tpu.memory_space<vmem>>) attributes {dimension_semantics = [#tpu.dimension_semantics<parallel>], iteration_bounds = array<i64: 1>, scalar_prefetch = 0 : i64, scratch_operands = 0 : i64, tpu.core_type = #tpu.core_type<tc>, window_params = [{transform_indices = @transform_0, window_bounds = array<i64: 85>}, {transform_indices = @transform_1, window_bounds = array<i64: 4, 1, 128>}, {transform_indices = @transform_2, window_bounds = array<i64: 1, 128>}]} {
    %c0 = arith.constant 0 : index
    %c0_0 = arith.constant 0 : index
    %c0_1 = arith.constant 0 : index
    %0 = vector.load %arg2[%c0, %c0_0, %c0_1] : memref<4x1x128xf32, #tpu.memory_space<vmem>>, vector<1x1x128xf32>
    %1 = vector.shape_cast %0 : vector<1x1x128xf32> to vector<1x128xf32>
    %c1 = arith.constant 1 : index
    %c0_2 = arith.constant 0 : index
    %c0_3 = arith.constant 0 : index
    %2 = vector.load %arg2[%c1, %c0_2, %c0_3] : memref<4x1x128xf32, #tpu.memory_space<vmem>>, vector<1x1x128xf32>
    %3 = vector.shape_cast %2 : vector<1x1x128xf32> to vector<1x128xf32>
    %c2 = arith.constant 2 : index
    %c0_4 = arith.constant 0 : index
    %c0_5 = arith.constant 0 : index
    %4 = vector.load %arg2[%c2, %c0_4, %c0_5] : memref<4x1x128xf32, #tpu.memory_space<vmem>>, vector<1x1x128xf32>
    %5 = vector.shape_cast %4 : vector<1x1x128xf32> to vector<1x128xf32>
    %c3 = arith.constant 3 : index
    %c0_6 = arith.constant 0 : index
    %c0_7 = arith.constant 0 : index
    %6 = vector.load %arg2[%c3, %c0_6, %c0_7] : memref<4x1x128xf32, #tpu.memory_space<vmem>>, vector<1x1x128xf32>
    %7 = vector.shape_cast %6 : vector<1x1x128xf32> to vector<1x128xf32>
    %c0_8 = arith.constant 0 : index
    %8 = memref.load %arg1[%c0_8] : memref<85xf32, #tpu.memory_space<smem>>
    %9 = vector.broadcast %8 : f32 to vector<1x128xf32>
    %10 = arith.mulf %1, %9 : vector<1x128xf32>
    %c1_9 = arith.constant 1 : index
    %11 = memref.load %arg1[%c1_9] : memref<85xf32, #tpu.memory_space<smem>>
    %12 = vector.broadcast %11 : f32 to vector<1x128xf32>
    %13 = arith.mulf %3, %12 : vector<1x128xf32>
    %14 = arith.addf %10, %13 : vector<1x128xf32>
    %c2_10 = arith.constant 2 : index
    %15 = memref.load %arg1[%c2_10] : memref<85xf32, #tpu.memory_space<smem>>
    %16 = vector.broadcast %15 : f32 to vector<1x128xf32>
    %17 = arith.mulf %5, %16 : vector<1x128xf32>
    %18 = arith.addf %14, %17 : vector<1x128xf32>
    %c3_11 = arith.constant 3 : index
    %19 = memref.load %arg1[%c3_11] : memref<85xf32, #tpu.memory_space<smem>>
    %20 = vector.broadcast %19 : f32 to vector<1x128xf32>
    %21 = arith.mulf %7, %20 : vector<1x128xf32>
    %22 = arith.addf %18, %21 : vector<1x128xf32>
    %c4 = arith.constant 4 : index
    %23 = memref.load %arg1[%c4] : memref<85xf32, #tpu.memory_space<smem>>
    %24 = vector.broadcast %23 : f32 to vector<1x128xf32>
    %25 = arith.addf %22, %24 : vector<1x128xf32>
    %c5 = arith.constant 5 : index
    %26 = memref.load %arg1[%c5] : memref<85xf32, #tpu.memory_space<smem>>
    %27 = vector.broadcast %26 : f32 to vector<1x128xf32>
    %28 = arith.mulf %1, %27 : vector<1x128xf32>
    %c6 = arith.constant 6 : index
    %29 = memref.load %arg1[%c6] : memref<85xf32, #tpu.memory_space<smem>>
    %30 = vector.broadcast %29 : f32 to vector<1x128xf32>
    %31 = arith.mulf %3, %30 : vector<1x128xf32>
    %32 = arith.addf %28, %31 : vector<1x128xf32>
    %c7 = arith.constant 7 : index
    %33 = memref.load %arg1[%c7] : memref<85xf32, #tpu.memory_space<smem>>
    %34 = vector.broadcast %33 : f32 to vector<1x128xf32>
    %35 = arith.mulf %5, %34 : vector<1x128xf32>
    %36 = arith.addf %32, %35 : vector<1x128xf32>
    %c8 = arith.constant 8 : index
    %37 = memref.load %arg1[%c8] : memref<85xf32, #tpu.memory_space<smem>>
    %38 = vector.broadcast %37 : f32 to vector<1x128xf32>
    %39 = arith.mulf %7, %38 : vector<1x128xf32>
    %40 = arith.addf %36, %39 : vector<1x128xf32>
    %c9 = arith.constant 9 : index
    %41 = memref.load %arg1[%c9] : memref<85xf32, #tpu.memory_space<smem>>
    %42 = vector.broadcast %41 : f32 to vector<1x128xf32>
    %43 = arith.addf %40, %42 : vector<1x128xf32>
    %c10 = arith.constant 10 : index
    %44 = memref.load %arg1[%c10] : memref<85xf32, #tpu.memory_space<smem>>
    %45 = vector.broadcast %44 : f32 to vector<1x128xf32>
    %46 = arith.mulf %1, %45 : vector<1x128xf32>
    %c11 = arith.constant 11 : index
    %47 = memref.load %arg1[%c11] : memref<85xf32, #tpu.memory_space<smem>>
    %48 = vector.broadcast %47 : f32 to vector<1x128xf32>
    %49 = arith.mulf %3, %48 : vector<1x128xf32>
    %50 = arith.addf %46, %49 : vector<1x128xf32>
    %c12 = arith.constant 12 : index
    %51 = memref.load %arg1[%c12] : memref<85xf32, #tpu.memory_space<smem>>
    %52 = vector.broadcast %51 : f32 to vector<1x128xf32>
    %53 = arith.mulf %5, %52 : vector<1x128xf32>
    %54 = arith.addf %50, %53 : vector<1x128xf32>
    %c13 = arith.constant 13 : index
    %55 = memref.load %arg1[%c13] : memref<85xf32, #tpu.memory_space<smem>>
    %56 = vector.broadcast %55 : f32 to vector<1x128xf32>
    %57 = arith.mulf %7, %56 : vector<1x128xf32>
    %58 = arith.addf %54, %57 : vector<1x128xf32>
    %c14 = arith.constant 14 : index
    %59 = memref.load %arg1[%c14] : memref<85xf32, #tpu.memory_space<smem>>
    %60 = vector.broadcast %59 : f32 to vector<1x128xf32>
    %61 = arith.addf %58, %60 : vector<1x128xf32>
    %c15 = arith.constant 15 : index
    %62 = memref.load %arg1[%c15] : memref<85xf32, #tpu.memory_space<smem>>
    %63 = vector.broadcast %62 : f32 to vector<1x128xf32>
    %64 = arith.mulf %1, %63 : vector<1x128xf32>
    %c16 = arith.constant 16 : index
    %65 = memref.load %arg1[%c16] : memref<85xf32, #tpu.memory_space<smem>>
    %66 = vector.broadcast %65 : f32 to vector<1x128xf32>
    %67 = arith.mulf %3, %66 : vector<1x128xf32>
    %68 = arith.addf %64, %67 : vector<1x128xf32>
    %c17 = arith.constant 17 : index
    %69 = memref.load %arg1[%c17] : memref<85xf32, #tpu.memory_space<smem>>
    %70 = vector.broadcast %69 : f32 to vector<1x128xf32>
    %71 = arith.mulf %5, %70 : vector<1x128xf32>
    %72 = arith.addf %68, %71 : vector<1x128xf32>
    %c18 = arith.constant 18 : index
    %73 = memref.load %arg1[%c18] : memref<85xf32, #tpu.memory_space<smem>>
    %74 = vector.broadcast %73 : f32 to vector<1x128xf32>
    %75 = arith.mulf %7, %74 : vector<1x128xf32>
    %76 = arith.addf %72, %75 : vector<1x128xf32>
    %c19 = arith.constant 19 : index
    %77 = memref.load %arg1[%c19] : memref<85xf32, #tpu.memory_space<smem>>
    %78 = vector.broadcast %77 : f32 to vector<1x128xf32>
    %79 = arith.addf %76, %78 : vector<1x128xf32>
    %cst = arith.constant 0.000000e+00 : f32
    %80 = vector.broadcast %cst : f32 to vector<1x128xf32>
    %81 = arith.maximumf %25, %80 : vector<1x128xf32>
    %cst_12 = arith.constant 0.000000e+00 : f32
    %82 = vector.broadcast %cst_12 : f32 to vector<1x128xf32>
    %83 = arith.maximumf %43, %82 : vector<1x128xf32>
    %cst_13 = arith.constant 0.000000e+00 : f32
    %84 = vector.broadcast %cst_13 : f32 to vector<1x128xf32>
    %85 = arith.maximumf %61, %84 : vector<1x128xf32>
    %cst_14 = arith.constant 0.000000e+00 : f32
    %86 = vector.broadcast %cst_14 : f32 to vector<1x128xf32>
    %87 = arith.maximumf %79, %86 : vector<1x128xf32>
    %c20 = arith.constant 20 : index
    %88 = memref.load %arg1[%c20] : memref<85xf32, #tpu.memory_space<smem>>
    %89 = vector.broadcast %88 : f32 to vector<1x128xf32>
    %90 = arith.mulf %81, %89 : vector<1x128xf32>
    %c21 = arith.constant 21 : index
    %91 = memref.load %arg1[%c21] : memref<85xf32, #tpu.memory_space<smem>>
    %92 = vector.broadcast %91 : f32 to vector<1x128xf32>
    %93 = arith.mulf %83, %92 : vector<1x128xf32>
    %94 = arith.addf %90, %93 : vector<1x128xf32>
    %c22 = arith.constant 22 : index
    %95 = memref.load %arg1[%c22] : memref<85xf32, #tpu.memory_space<smem>>
    %96 = vector.broadcast %95 : f32 to vector<1x128xf32>
    %97 = arith.mulf %85, %96 : vector<1x128xf32>
    %98 = arith.addf %94, %97 : vector<1x128xf32>
    %c23 = arith.constant 23 : index
    %99 = memref.load %arg1[%c23] : memref<85xf32, #tpu.memory_space<smem>>
    %100 = vector.broadcast %99 : f32 to vector<1x128xf32>
    %101 = arith.mulf %87, %100 : vector<1x128xf32>
    %102 = arith.addf %98, %101 : vector<1x128xf32>
    %c24 = arith.constant 24 : index
    %103 = memref.load %arg1[%c24] : memref<85xf32, #tpu.memory_space<smem>>
    %104 = vector.broadcast %103 : f32 to vector<1x128xf32>
    %105 = arith.addf %102, %104 : vector<1x128xf32>
    %c25 = arith.constant 25 : index
    %106 = memref.load %arg1[%c25] : memref<85xf32, #tpu.memory_space<smem>>
    %107 = vector.broadcast %106 : f32 to vector<1x128xf32>
    %108 = arith.mulf %81, %107 : vector<1x128xf32>
    %c26 = arith.constant 26 : index
    %109 = memref.load %arg1[%c26] : memref<85xf32, #tpu.memory_space<smem>>
    %110 = vector.broadcast %109 : f32 to vector<1x128xf32>
    %111 = arith.mulf %83, %110 : vector<1x128xf32>
    %112 = arith.addf %108, %111 : vector<1x128xf32>
    %c27 = arith.constant 27 : index
    %113 = memref.load %arg1[%c27] : memref<85xf32, #tpu.memory_space<smem>>
    %114 = vector.broadcast %113 : f32 to vector<1x128xf32>
    %115 = arith.mulf %85, %114 : vector<1x128xf32>
    %116 = arith.addf %112, %115 : vector<1x128xf32>
    %c28 = arith.constant 28 : index
    %117 = memref.load %arg1[%c28] : memref<85xf32, #tpu.memory_space<smem>>
    %118 = vector.broadcast %117 : f32 to vector<1x128xf32>
    %119 = arith.mulf %87, %118 : vector<1x128xf32>
    %120 = arith.addf %116, %119 : vector<1x128xf32>
    %c29 = arith.constant 29 : index
    %121 = memref.load %arg1[%c29] : memref<85xf32, #tpu.memory_space<smem>>
    %122 = vector.broadcast %121 : f32 to vector<1x128xf32>
    %123 = arith.addf %120, %122 : vector<1x128xf32>
    %c30 = arith.constant 30 : index
    %124 = memref.load %arg1[%c30] : memref<85xf32, #tpu.memory_space<smem>>
    %125 = vector.broadcast %124 : f32 to vector<1x128xf32>
    %126 = arith.mulf %81, %125 : vector<1x128xf32>
    %c31 = arith.constant 31 : index
    %127 = memref.load %arg1[%c31] : memref<85xf32, #tpu.memory_space<smem>>
    %128 = vector.broadcast %127 : f32 to vector<1x128xf32>
    %129 = arith.mulf %83, %128 : vector<1x128xf32>
    %130 = arith.addf %126, %129 : vector<1x128xf32>
    %c32 = arith.constant 32 : index
    %131 = memref.load %arg1[%c32] : memref<85xf32, #tpu.memory_space<smem>>
    %132 = vector.broadcast %131 : f32 to vector<1x128xf32>
    %133 = arith.mulf %85, %132 : vector<1x128xf32>
    %134 = arith.addf %130, %133 : vector<1x128xf32>
    %c33 = arith.constant 33 : index
    %135 = memref.load %arg1[%c33] : memref<85xf32, #tpu.memory_space<smem>>
    %136 = vector.broadcast %135 : f32 to vector<1x128xf32>
    %137 = arith.mulf %87, %136 : vector<1x128xf32>
    %138 = arith.addf %134, %137 : vector<1x128xf32>
    %c34 = arith.constant 34 : index
    %139 = memref.load %arg1[%c34] : memref<85xf32, #tpu.memory_space<smem>>
    %140 = vector.broadcast %139 : f32 to vector<1x128xf32>
    %141 = arith.addf %138, %140 : vector<1x128xf32>
    %c35 = arith.constant 35 : index
    %142 = memref.load %arg1[%c35] : memref<85xf32, #tpu.memory_space<smem>>
    %143 = vector.broadcast %142 : f32 to vector<1x128xf32>
    %144 = arith.mulf %81, %143 : vector<1x128xf32>
    %c36 = arith.constant 36 : index
    %145 = memref.load %arg1[%c36] : memref<85xf32, #tpu.memory_space<smem>>
    %146 = vector.broadcast %145 : f32 to vector<1x128xf32>
    %147 = arith.mulf %83, %146 : vector<1x128xf32>
    %148 = arith.addf %144, %147 : vector<1x128xf32>
    %c37 = arith.constant 37 : index
    %149 = memref.load %arg1[%c37] : memref<85xf32, #tpu.memory_space<smem>>
    %150 = vector.broadcast %149 : f32 to vector<1x128xf32>
    %151 = arith.mulf %85, %150 : vector<1x128xf32>
    %152 = arith.addf %148, %151 : vector<1x128xf32>
    %c38 = arith.constant 38 : index
    %153 = memref.load %arg1[%c38] : memref<85xf32, #tpu.memory_space<smem>>
    %154 = vector.broadcast %153 : f32 to vector<1x128xf32>
    %155 = arith.mulf %87, %154 : vector<1x128xf32>
    %156 = arith.addf %152, %155 : vector<1x128xf32>
    %c39 = arith.constant 39 : index
    %157 = memref.load %arg1[%c39] : memref<85xf32, #tpu.memory_space<smem>>
    %158 = vector.broadcast %157 : f32 to vector<1x128xf32>
    %159 = arith.addf %156, %158 : vector<1x128xf32>
    %cst_15 = arith.constant 0.000000e+00 : f32
    %160 = vector.broadcast %cst_15 : f32 to vector<1x128xf32>
    %161 = arith.maximumf %105, %160 : vector<1x128xf32>
    %cst_16 = arith.constant 0.000000e+00 : f32
    %162 = vector.broadcast %cst_16 : f32 to vector<1x128xf32>
    %163 = arith.maximumf %123, %162 : vector<1x128xf32>
    %cst_17 = arith.constant 0.000000e+00 : f32
    %164 = vector.broadcast %cst_17 : f32 to vector<1x128xf32>
    %165 = arith.maximumf %141, %164 : vector<1x128xf32>
    %cst_18 = arith.constant 0.000000e+00 : f32
    %166 = vector.broadcast %cst_18 : f32 to vector<1x128xf32>
    %167 = arith.maximumf %159, %166 : vector<1x128xf32>
    %c40 = arith.constant 40 : index
    %168 = memref.load %arg1[%c40] : memref<85xf32, #tpu.memory_space<smem>>
    %169 = vector.broadcast %168 : f32 to vector<1x128xf32>
    %170 = arith.mulf %161, %169 : vector<1x128xf32>
    %c41 = arith.constant 41 : index
    %171 = memref.load %arg1[%c41] : memref<85xf32, #tpu.memory_space<smem>>
    %172 = vector.broadcast %171 : f32 to vector<1x128xf32>
    %173 = arith.mulf %163, %172 : vector<1x128xf32>
    %174 = arith.addf %170, %173 : vector<1x128xf32>
    %c42 = arith.constant 42 : index
    %175 = memref.load %arg1[%c42] : memref<85xf32, #tpu.memory_space<smem>>
    %176 = vector.broadcast %175 : f32 to vector<1x128xf32>
    %177 = arith.mulf %165, %176 : vector<1x128xf32>
    %178 = arith.addf %174, %177 : vector<1x128xf32>
    %c43 = arith.constant 43 : index
    %179 = memref.load %arg1[%c43] : memref<85xf32, #tpu.memory_space<smem>>
    %180 = vector.broadcast %179 : f32 to vector<1x128xf32>
    %181 = arith.mulf %167, %180 : vector<1x128xf32>
    %182 = arith.addf %178, %181 : vector<1x128xf32>
    %c44 = arith.constant 44 : index
    %183 = memref.load %arg1[%c44] : memref<85xf32, #tpu.memory_space<smem>>
    %184 = vector.broadcast %183 : f32 to vector<1x128xf32>
    %185 = arith.addf %182, %184 : vector<1x128xf32>
    %c45 = arith.constant 45 : index
    %186 = memref.load %arg1[%c45] : memref<85xf32, #tpu.memory_space<smem>>
    %187 = vector.broadcast %186 : f32 to vector<1x128xf32>
    %188 = arith.mulf %161, %187 : vector<1x128xf32>
    %c46 = arith.constant 46 : index
    %189 = memref.load %arg1[%c46] : memref<85xf32, #tpu.memory_space<smem>>
    %190 = vector.broadcast %189 : f32 to vector<1x128xf32>
    %191 = arith.mulf %163, %190 : vector<1x128xf32>
    %192 = arith.addf %188, %191 : vector<1x128xf32>
    %c47 = arith.constant 47 : index
    %193 = memref.load %arg1[%c47] : memref<85xf32, #tpu.memory_space<smem>>
    %194 = vector.broadcast %193 : f32 to vector<1x128xf32>
    %195 = arith.mulf %165, %194 : vector<1x128xf32>
    %196 = arith.addf %192, %195 : vector<1x128xf32>
    %c48 = arith.constant 48 : index
    %197 = memref.load %arg1[%c48] : memref<85xf32, #tpu.memory_space<smem>>
    %198 = vector.broadcast %197 : f32 to vector<1x128xf32>
    %199 = arith.mulf %167, %198 : vector<1x128xf32>
    %200 = arith.addf %196, %199 : vector<1x128xf32>
    %c49 = arith.constant 49 : index
    %201 = memref.load %arg1[%c49] : memref<85xf32, #tpu.memory_space<smem>>
    %202 = vector.broadcast %201 : f32 to vector<1x128xf32>
    %203 = arith.addf %200, %202 : vector<1x128xf32>
    %c50 = arith.constant 50 : index
    %204 = memref.load %arg1[%c50] : memref<85xf32, #tpu.memory_space<smem>>
    %205 = vector.broadcast %204 : f32 to vector<1x128xf32>
    %206 = arith.mulf %161, %205 : vector<1x128xf32>
    %c51 = arith.constant 51 : index
    %207 = memref.load %arg1[%c51] : memref<85xf32, #tpu.memory_space<smem>>
    %208 = vector.broadcast %207 : f32 to vector<1x128xf32>
    %209 = arith.mulf %163, %208 : vector<1x128xf32>
    %210 = arith.addf %206, %209 : vector<1x128xf32>
    %c52 = arith.constant 52 : index
    %211 = memref.load %arg1[%c52] : memref<85xf32, #tpu.memory_space<smem>>
    %212 = vector.broadcast %211 : f32 to vector<1x128xf32>
    %213 = arith.mulf %165, %212 : vector<1x128xf32>
    %214 = arith.addf %210, %213 : vector<1x128xf32>
    %c53 = arith.constant 53 : index
    %215 = memref.load %arg1[%c53] : memref<85xf32, #tpu.memory_space<smem>>
    %216 = vector.broadcast %215 : f32 to vector<1x128xf32>
    %217 = arith.mulf %167, %216 : vector<1x128xf32>
    %218 = arith.addf %214, %217 : vector<1x128xf32>
    %c54 = arith.constant 54 : index
    %219 = memref.load %arg1[%c54] : memref<85xf32, #tpu.memory_space<smem>>
    %220 = vector.broadcast %219 : f32 to vector<1x128xf32>
    %221 = arith.addf %218, %220 : vector<1x128xf32>
    %c55 = arith.constant 55 : index
    %222 = memref.load %arg1[%c55] : memref<85xf32, #tpu.memory_space<smem>>
    %223 = vector.broadcast %222 : f32 to vector<1x128xf32>
    %224 = arith.mulf %161, %223 : vector<1x128xf32>
    %c56 = arith.constant 56 : index
    %225 = memref.load %arg1[%c56] : memref<85xf32, #tpu.memory_space<smem>>
    %226 = vector.broadcast %225 : f32 to vector<1x128xf32>
    %227 = arith.mulf %163, %226 : vector<1x128xf32>
    %228 = arith.addf %224, %227 : vector<1x128xf32>
    %c57 = arith.constant 57 : index
    %229 = memref.load %arg1[%c57] : memref<85xf32, #tpu.memory_space<smem>>
    %230 = vector.broadcast %229 : f32 to vector<1x128xf32>
    %231 = arith.mulf %165, %230 : vector<1x128xf32>
    %232 = arith.addf %228, %231 : vector<1x128xf32>
    %c58 = arith.constant 58 : index
    %233 = memref.load %arg1[%c58] : memref<85xf32, #tpu.memory_space<smem>>
    %234 = vector.broadcast %233 : f32 to vector<1x128xf32>
    %235 = arith.mulf %167, %234 : vector<1x128xf32>
    %236 = arith.addf %232, %235 : vector<1x128xf32>
    %c59 = arith.constant 59 : index
    %237 = memref.load %arg1[%c59] : memref<85xf32, #tpu.memory_space<smem>>
    %238 = vector.broadcast %237 : f32 to vector<1x128xf32>
    %239 = arith.addf %236, %238 : vector<1x128xf32>
    %cst_19 = arith.constant 0.000000e+00 : f32
    %240 = vector.broadcast %cst_19 : f32 to vector<1x128xf32>
    %241 = arith.maximumf %185, %240 : vector<1x128xf32>
    %cst_20 = arith.constant 0.000000e+00 : f32
    %242 = vector.broadcast %cst_20 : f32 to vector<1x128xf32>
    %243 = arith.maximumf %203, %242 : vector<1x128xf32>
    %cst_21 = arith.constant 0.000000e+00 : f32
    %244 = vector.broadcast %cst_21 : f32 to vector<1x128xf32>
    %245 = arith.maximumf %221, %244 : vector<1x128xf32>
    %cst_22 = arith.constant 0.000000e+00 : f32
    %246 = vector.broadcast %cst_22 : f32 to vector<1x128xf32>
    %247 = arith.maximumf %239, %246 : vector<1x128xf32>
    %c60 = arith.constant 60 : index
    %248 = memref.load %arg1[%c60] : memref<85xf32, #tpu.memory_space<smem>>
    %249 = vector.broadcast %248 : f32 to vector<1x128xf32>
    %250 = arith.mulf %241, %249 : vector<1x128xf32>
    %c61 = arith.constant 61 : index
    %251 = memref.load %arg1[%c61] : memref<85xf32, #tpu.memory_space<smem>>
    %252 = vector.broadcast %251 : f32 to vector<1x128xf32>
    %253 = arith.mulf %243, %252 : vector<1x128xf32>
    %254 = arith.addf %250, %253 : vector<1x128xf32>
    %c62 = arith.constant 62 : index
    %255 = memref.load %arg1[%c62] : memref<85xf32, #tpu.memory_space<smem>>
    %256 = vector.broadcast %255 : f32 to vector<1x128xf32>
    %257 = arith.mulf %245, %256 : vector<1x128xf32>
    %258 = arith.addf %254, %257 : vector<1x128xf32>
    %c63 = arith.constant 63 : index
    %259 = memref.load %arg1[%c63] : memref<85xf32, #tpu.memory_space<smem>>
    %260 = vector.broadcast %259 : f32 to vector<1x128xf32>
    %261 = arith.mulf %247, %260 : vector<1x128xf32>
    %262 = arith.addf %258, %261 : vector<1x128xf32>
    %c64 = arith.constant 64 : index
    %263 = memref.load %arg1[%c64] : memref<85xf32, #tpu.memory_space<smem>>
    %264 = vector.broadcast %263 : f32 to vector<1x128xf32>
    %265 = arith.addf %262, %264 : vector<1x128xf32>
    %c65 = arith.constant 65 : index
    %266 = memref.load %arg1[%c65] : memref<85xf32, #tpu.memory_space<smem>>
    %267 = vector.broadcast %266 : f32 to vector<1x128xf32>
    %268 = arith.mulf %241, %267 : vector<1x128xf32>
    %c66 = arith.constant 66 : index
    %269 = memref.load %arg1[%c66] : memref<85xf32, #tpu.memory_space<smem>>
    %270 = vector.broadcast %269 : f32 to vector<1x128xf32>
    %271 = arith.mulf %243, %270 : vector<1x128xf32>
    %272 = arith.addf %268, %271 : vector<1x128xf32>
    %c67 = arith.constant 67 : index
    %273 = memref.load %arg1[%c67] : memref<85xf32, #tpu.memory_space<smem>>
    %274 = vector.broadcast %273 : f32 to vector<1x128xf32>
    %275 = arith.mulf %245, %274 : vector<1x128xf32>
    %276 = arith.addf %272, %275 : vector<1x128xf32>
    %c68 = arith.constant 68 : index
    %277 = memref.load %arg1[%c68] : memref<85xf32, #tpu.memory_space<smem>>
    %278 = vector.broadcast %277 : f32 to vector<1x128xf32>
    %279 = arith.mulf %247, %278 : vector<1x128xf32>
    %280 = arith.addf %276, %279 : vector<1x128xf32>
    %c69 = arith.constant 69 : index
    %281 = memref.load %arg1[%c69] : memref<85xf32, #tpu.memory_space<smem>>
    %282 = vector.broadcast %281 : f32 to vector<1x128xf32>
    %283 = arith.addf %280, %282 : vector<1x128xf32>
    %c70 = arith.constant 70 : index
    %284 = memref.load %arg1[%c70] : memref<85xf32, #tpu.memory_space<smem>>
    %285 = vector.broadcast %284 : f32 to vector<1x128xf32>
    %286 = arith.mulf %241, %285 : vector<1x128xf32>
    %c71 = arith.constant 71 : index
    %287 = memref.load %arg1[%c71] : memref<85xf32, #tpu.memory_space<smem>>
    %288 = vector.broadcast %287 : f32 to vector<1x128xf32>
    %289 = arith.mulf %243, %288 : vector<1x128xf32>
    %290 = arith.addf %286, %289 : vector<1x128xf32>
    %c72 = arith.constant 72 : index
    %291 = memref.load %arg1[%c72] : memref<85xf32, #tpu.memory_space<smem>>
    %292 = vector.broadcast %291 : f32 to vector<1x128xf32>
    %293 = arith.mulf %245, %292 : vector<1x128xf32>
    %294 = arith.addf %290, %293 : vector<1x128xf32>
    %c73 = arith.constant 73 : index
    %295 = memref.load %arg1[%c73] : memref<85xf32, #tpu.memory_space<smem>>
    %296 = vector.broadcast %295 : f32 to vector<1x128xf32>
    %297 = arith.mulf %247, %296 : vector<1x128xf32>
    %298 = arith.addf %294, %297 : vector<1x128xf32>
    %c74 = arith.constant 74 : index
    %299 = memref.load %arg1[%c74] : memref<85xf32, #tpu.memory_space<smem>>
    %300 = vector.broadcast %299 : f32 to vector<1x128xf32>
    %301 = arith.addf %298, %300 : vector<1x128xf32>
    %c75 = arith.constant 75 : index
    %302 = memref.load %arg1[%c75] : memref<85xf32, #tpu.memory_space<smem>>
    %303 = vector.broadcast %302 : f32 to vector<1x128xf32>
    %304 = arith.mulf %241, %303 : vector<1x128xf32>
    %c76 = arith.constant 76 : index
    %305 = memref.load %arg1[%c76] : memref<85xf32, #tpu.memory_space<smem>>
    %306 = vector.broadcast %305 : f32 to vector<1x128xf32>
    %307 = arith.mulf %243, %306 : vector<1x128xf32>
    %308 = arith.addf %304, %307 : vector<1x128xf32>
    %c77 = arith.constant 77 : index
    %309 = memref.load %arg1[%c77] : memref<85xf32, #tpu.memory_space<smem>>
    %310 = vector.broadcast %309 : f32 to vector<1x128xf32>
    %311 = arith.mulf %245, %310 : vector<1x128xf32>
    %312 = arith.addf %308, %311 : vector<1x128xf32>
    %c78 = arith.constant 78 : index
    %313 = memref.load %arg1[%c78] : memref<85xf32, #tpu.memory_space<smem>>
    %314 = vector.broadcast %313 : f32 to vector<1x128xf32>
    %315 = arith.mulf %247, %314 : vector<1x128xf32>
    %316 = arith.addf %312, %315 : vector<1x128xf32>
    %c79 = arith.constant 79 : index
    %317 = memref.load %arg1[%c79] : memref<85xf32, #tpu.memory_space<smem>>
    %318 = vector.broadcast %317 : f32 to vector<1x128xf32>
    %319 = arith.addf %316, %318 : vector<1x128xf32>
    %cst_23 = arith.constant 0.000000e+00 : f32
    %320 = vector.broadcast %cst_23 : f32 to vector<1x128xf32>
    %321 = arith.maximumf %265, %320 : vector<1x128xf32>
    %cst_24 = arith.constant 0.000000e+00 : f32
    %322 = vector.broadcast %cst_24 : f32 to vector<1x128xf32>
    %323 = arith.maximumf %283, %322 : vector<1x128xf32>
    %cst_25 = arith.constant 0.000000e+00 : f32
    %324 = vector.broadcast %cst_25 : f32 to vector<1x128xf32>
    %325 = arith.maximumf %301, %324 : vector<1x128xf32>
    %cst_26 = arith.constant 0.000000e+00 : f32
    %326 = vector.broadcast %cst_26 : f32 to vector<1x128xf32>
    %327 = arith.maximumf %319, %326 : vector<1x128xf32>
    %c80 = arith.constant 80 : index
    %328 = memref.load %arg1[%c80] : memref<85xf32, #tpu.memory_space<smem>>
    %329 = vector.broadcast %328 : f32 to vector<1x128xf32>
    %330 = arith.mulf %321, %329 : vector<1x128xf32>
    %c81 = arith.constant 81 : index
    %331 = memref.load %arg1[%c81] : memref<85xf32, #tpu.memory_space<smem>>
    %332 = vector.broadcast %331 : f32 to vector<1x128xf32>
    %333 = arith.mulf %323, %332 : vector<1x128xf32>
    %334 = arith.addf %330, %333 : vector<1x128xf32>
    %c82 = arith.constant 82 : index
    %335 = memref.load %arg1[%c82] : memref<85xf32, #tpu.memory_space<smem>>
    %336 = vector.broadcast %335 : f32 to vector<1x128xf32>
    %337 = arith.mulf %325, %336 : vector<1x128xf32>
    %338 = arith.addf %334, %337 : vector<1x128xf32>
    %c83 = arith.constant 83 : index
    %339 = memref.load %arg1[%c83] : memref<85xf32, #tpu.memory_space<smem>>
    %340 = vector.broadcast %339 : f32 to vector<1x128xf32>
    %341 = arith.mulf %327, %340 : vector<1x128xf32>
    %342 = arith.addf %338, %341 : vector<1x128xf32>
    %c84 = arith.constant 84 : index
    %343 = memref.load %arg1[%c84] : memref<85xf32, #tpu.memory_space<smem>>
    %344 = vector.broadcast %343 : f32 to vector<1x128xf32>
    %345 = arith.addf %342, %344 : vector<1x128xf32>
    %346 = arith.negf %345 : vector<1x128xf32>
    %347 = math.exp %346 : vector<1x128xf32>
    %cst_27 = arith.constant 1.000000e+00 : f32
    %348 = vector.broadcast %cst_27 : f32 to vector<1x128xf32>
    %349 = arith.addf %348, %347 : vector<1x128xf32>
    %350 = arith.divf %348, %349 : vector<1x128xf32>
    %c0_28 = arith.constant 0 : index
    %c0_29 = arith.constant 0 : index
    %351 = vector.load %arg3[%c0_28, %c0_29] : memref<1x128xf32, #tpu.memory_space<vmem>>, vector<1x128xf32>
    tpu.vector_store %arg3[%c0_28, %c0_29], %350 {strides = array<i32>} : memref<1x128xf32, #tpu.memory_space<vmem>>, vector<1x128xf32>,
    return
  }
  func.func @transform_0(%arg0: i32) -> i32 {
    %c0_i32 = arith.constant 0 : i32
    %c0_i32_0 = arith.constant 0 : i32
    return %c0_i32 : i32
  }
  func.func @transform_1(%arg0: i32) -> (i32, i32, i32) {
    %c0_i32 = arith.constant 0 : i32
    %c0_i32_0 = arith.constant 0 : i32
    %c0_i32_1 = arith.constant 0 : i32
    return %c0_i32, %arg0, %c0_i32_0 : i32, i32, i32
  }
  func.func @transform_2(%arg0: i32) -> (i32, i32) {
    %c0_i32 = arith.constant 0 : i32
    %c0_i32_0 = arith.constant 0 : i32
    return %arg0, %c0_i32 : i32, i32
  }
}

</mosaic_0001>

<bundles_post_ra>
// kernel: _forward.1
= control target key start
LH: loop header
LB: loop body
LE: loop exit
PB: predicated region body
PF: predicated region fallthrough
CT: control target
= control target key end

     0   :  { %7 = vsyncpa [#allocation3], 0  ;;  %s611_s0 = inlined_call_operand.vmem [shape: f32[85], index: 0, kind: input, shape index: {}]   ;;  %s612_s1 = inlined_call_operand.vmem [shape: f32[4,1,128], index: 1, kind: input, shape index: {}]   ;;  %s613_s2 = inlined_call_operand.vmem [shape: f32[1,128], index: 2, kind: output, shape index: {}]  }
   0x1   :  { %s14_s11 = sshll.u32 %s611_s0, 4  ;;  %s15_s11 = int_to_ptr.vmem [resolvable:$true] %s14_s11 }
   0x2   :  { %s458_s12 = scalar_lea.vmem %s15_s11, 16  ;;  %p463_p1 = scmp.lt.s32.totalorder %s15_s11, %s15_s11 }
   0x3   :  { %p459_p0 = scmp.ne.s32.totalorder %s15_s11, %s458_s12  ;;  %p464_p2 = scmp.lt.s32.totalorder %s458_s12, %s458_s12 }
   0x5   :  { %p465_p3 = por %p464_p2, %p463_p1 }
   0x7   :  { %p466_p4 = pnand %p465_p3, %p459_p0 }
   0x9   :  { %469 = shalt.err (!%p466_p4)
}
   0xa   :  { %s472_s13 = smov [#allocation2]  }
   0xb   :  { %17 = dma.vmem_to_smem %s15_s11, 16, %s472_s13, [#allocation3]  }
   0xc   :  { %470 = dma.done.wait [#allocation3], 16  }
   0xd   :  { %471 = vsyncadd [#allocation3], 4294967280 }
   0xe   :  { %23 = sfence }
   0xf   :  { %s31_s14 = sld [smem:[#allocation2]]  ;;  %v24_v0 = vld [vmem:[%s612_s1] sm:$0x1]  ;;  %v365_v1 = vld [vmem:[%s612_s1 + $0x1] sm:$0x1] }
  0x10   :  { %s368_s15 = sld [smem:[#allocation2 + $0x1]]  ;;  %v502_v2 = vld [vmem:[%s612_s1 + $0x2] sm:$0x1]  ;;  %v507_v6 = vld [vmem:[%s612_s1 + $0x3] sm:$0x1] }
  0x11   :  { %s369_s16 = sld [smem:[#allocation2 + $0x2]] }
  0x12   :  { %s370_s17 = sld [smem:[#allocation2 + $0x3]] }
  0x13   :  { %s494_s0 = sld [smem:[#allocation2 + $0x4]] }
  0x14   :  { %s372_s22 = sld [smem:[#allocation2 + $0x5]] }
  0x15   :  { %v32_v3 = vstv %s31_s14  ;;  %s373_s25 = sld [smem:[#allocation2 + $0x6]] }
  0x16   :  { %v33_v4 = vmul.f32 %v32_v3, %v24_v0  ;;  %v35_v5 = vstv %s368_s15  ;;  %s374_s26 = sld [smem:[#allocation2 + $0x7]] }
  0x17   :  { %v36_v7 = vmul.f32 %v365_v1, %v35_v5  ;;  %v39_v8 = vstv %s369_s16  ;;  %s375_s29 = sld [smem:[#allocation2 + $0x8]] }
  0x18   :  { %v40_v9 = vmul.f32 %v502_v2, %v39_v8  ;;  %v43_v10 = vstv %s370_s17  ;;  %s510_s30 = sld [smem:[#allocation2 + $0x9]] }
  0x19   :  { %v37_v11 = vadd.f32 %v36_v7, %v33_v4  ;;  %s377_s3 = sld [smem:[#allocation2 + $0xa]]  ;;  %v44_v12 = vmul.f32 %v507_v6, %v43_v10  ;;  %v47_v24 = vstv %s494_s0 }
  0x1a   :  { %v50_v13 = vstv %s372_s22  ;;  %s378_s4 = sld [smem:[#allocation2 + $0xb]] }
  0x1b   :  { %v41_v14 = vadd.f32 %v40_v9, %v37_v11  ;;  %v51_v15 = vmul.f32 %v50_v13, %v24_v0  ;;  %v53_v16 = vstv %s373_s25  ;;  %s379_s1 = sld [smem:[#allocation2 + $0xc]] }
  0x1c   :  { %v54_v17 = vmul.f32 %v365_v1, %v53_v16  ;;  %v57_v18 = vstv %s374_s26  ;;  %s380_s5 = sld [smem:[#allocation2 + $0xd]] }
  0x1d   :  { %v58_v19 = vmul.f32 %v502_v2, %v57_v18  ;;  %v61_v20 = vstv %s375_s29  ;;  %s514_s6 = sld [smem:[#allocation2 + $0xe]]  ;;  %v45_v21 = vadd.f32 %v44_v12, %v41_v14 }
  0x1e   :  { %v55_v22 = vadd.f32 %v54_v17, %v51_v15  ;;  %v62_v23 = vmul.f32 %v507_v6, %v61_v20  ;;  %s382_s7 = sld [smem:[#allocation2 + $0xf]]  ;;  %v65_v29 = vstv %s510_s30 }
  0x1f   :  { %v68_v25 = vstv %s377_s3  ;;  %s383_s8 = sld [smem:[#allocation2 + $0x10]]  ;;  %v48_v32 = vadd.f32 %v47_v24, %v45_v21 }
  0x20   :  { %v59_v26 = vadd.f32 %v58_v19, %v55_v22  ;;  %v69_v27 = vmul.f32 %v68_v25, %v24_v0  ;;  %v71_v28 = vstv %s378_s4  ;;  %s384_s9 = sld [smem:[#allocation2 + $0x11]] }
  0x21   :  { %v72_v30 = vmul.f32 %v365_v1, %v71_v28  ;;  %v75_v31 = vstv %s379_s1  ;;  %s385_s10 = sld [smem:[#allocation2 + $0x12]]  ;;  %v524_v46 = vmax.f32 %v48_v32, 0.0 }
  0x22   :  { %v63_v33 = vadd.f32 %v62_v23, %v59_v26  ;;  %v76_v34 = vmul.f32 %v502_v2, %v75_v31  ;;  %v79_v35 = vstv %s380_s5  ;;  %s520_s11 = sld [smem:[#allocation2 + $0x13]] }
  0x23   :  { %v73_v36 = vadd.f32 %v72_v30, %v69_v27  ;;  %v80_v37 = vmul.f32 %v507_v6, %v79_v35  ;;  %s387_s12 = sld [smem:[#allocation2 + $0x14]]  ;;  %v83_v43 = vstv %s514_s6 }
  0x24   :  { %v66_v38 = vadd.f32 %v65_v29, %v63_v33  ;;  %v86_v39 = vstv %s382_s7  ;;  %s388_s13 = sld [smem:[#allocation2 + $0x15]] }
  0x25   :  { %v77_v40 = vadd.f32 %v76_v34, %v73_v36  ;;  %v87_v41 = vmul.f32 %v86_v39, %v24_v0  ;;  %v89_v42 = vstv %s383_s8  ;;  %s389_s14 = sld [smem:[#allocation2 + $0x16]] }
  0x26   :  { %v90_v44 = vmul.f32 %v365_v1, %v89_v42  ;;  %v93_v45 = vstv %s384_s9  ;;  %s526_s15 = sld [smem:[#allocation2 + $0x17]]  ;;  %v529_v50 = vmax.f32 %v66_v38, 0.0 }
  0x27   :  { %v81_v47 = vadd.f32 %v80_v37, %v77_v40  ;;  %v94_v48 = vmul.f32 %v502_v2, %v93_v45  ;;  %v97_v49 = vstv %s385_s10  ;;  %s531_s16 = sld [smem:[#allocation2 + $0x18]] }
  0x28   :  { %v91_v51 = vadd.f32 %v90_v44, %v87_v41  ;;  %v98_v52 = vmul.f32 %v507_v6, %v97_v49  ;;  %s392_s17 = sld [smem:[#allocation2 + $0x19]]  ;;  %v101_v58 = vstv %s520_s11 }
  0x29   :  { %v84_v53 = vadd.f32 %v83_v43, %v81_v47  ;;  %v108_v54 = vstv %s387_s12  ;;  %s393_s18 = sld [smem:[#allocation2 + $0x1a]] }
  0x2a   :  { %v95_v55 = vadd.f32 %v94_v48, %v91_v51  ;;  %v109_v56 = vmul.f32 %v108_v54, %v524_v46  ;;  %v111_v57 = vstv %s388_s13  ;;  %s394_s19 = sld [smem:[#allocation2 + $0x1b]] }
  0x2b   :  { %v105_v59 = vmax.f32 %v84_v53, 0.0  ;;  %v112_v60 = vmul.f32 %v111_v57, %v529_v50  ;;  %v115_v61 = vstv %s389_s14  ;;  %s395_s0 = sld [smem:[#allocation2 + $0x1c]] }
  0x2c   :  { %v99_v62 = vadd.f32 %v98_v52, %v95_v55  ;;  %s537_s20 = sld [smem:[#allocation2 + $0x1d]]  ;;  %v119_v3 = vstv %s526_s15 }
  0x2d   :  { %v113_v63 = vadd.f32 %v112_v60, %v109_v56  ;;  %v116_v0 = vmul.f32 %v115_v61, %v105_v59  ;;  %s397_s21 = sld [smem:[#allocation2 + $0x1e]]  ;;  %v123_v15 = vstv %s531_s16 }
  0x2e   :  { %v102_v1 = vadd.f32 %v101_v58, %v99_v62  ;;  %v126_v2 = vstv %s392_s17  ;;  %s398_s22 = sld [smem:[#allocation2 + $0x1f]] }
  0x2f   :  { %v127_v4 = vmul.f32 %v126_v2, %v524_v46  ;;  %v129_v5 = vstv %s393_s18  ;;  %s399_s23 = sld [smem:[#allocation2 + $0x20]]  ;;  %v117_v7 = vadd.f32 %v116_v0, %v113_v63 }
  0x30   :  { %v106_v6 = vmax.f32 %v102_v1, 0.0  ;;  %v130_v8 = vmul.f32 %v129_v5, %v529_v50  ;;  %v133_v9 = vstv %s394_s19  ;;  %s400_s24 = sld [smem:[#allocation2 + $0x21]] }
  0x31   :  { %v134_v10 = vmul.f32 %v133_v9, %v105_v59  ;;  %v137_v11 = vstv %s395_s0  ;;  %s542_s25 = sld [smem:[#allocation2 + $0x22]] }
  0x32   :  { %v120_v12 = vmul.f32 %v119_v3, %v106_v6  ;;  %v131_v13 = vadd.f32 %v130_v8, %v127_v4  ;;  %v138_v14 = vmul.f32 %v137_v11, %v106_v6  ;;  %s402_s26 = sld [smem:[#allocation2 + $0x23]]  ;;  %v141_v21 = vstv %s537_s20 }
  0x33   :  { %v144_v16 = vstv %s397_s21  ;;  %s403_s27 = sld [smem:[#allocation2 + $0x24]] }
  0x34   :  { %v121_v17 = vadd.f32 %v120_v12, %v117_v7  ;;  %v135_v18 = vadd.f32 %v134_v10, %v131_v13  ;;  %v145_v19 = vmul.f32 %v144_v16, %v524_v46  ;;  %v147_v20 = vstv %s398_s22  ;;  %s404_s28 = sld [smem:[#allocation2 + $0x25]] }
  0x35   :  { %v148_v22 = vmul.f32 %v147_v20, %v529_v50  ;;  %v151_v23 = vstv %s399_s23  ;;  %s405_s29 = sld [smem:[#allocation2 + $0x26]] }
  0x36   :  { %v124_v24 = vadd.f32 %v123_v15, %v121_v17  ;;  %v139_v25 = vadd.f32 %v138_v14, %v135_v18  ;;  %v152_v26 = vmul.f32 %v151_v23, %v105_v59  ;;  %v155_v27 = vstv %s400_s24  ;;  %s548_s30 = sld [smem:[#allocation2 + $0x27]] }
  0x37   :  { %v149_v28 = vadd.f32 %v148_v22, %v145_v19  ;;  %v156_v29 = vmul.f32 %v155_v27, %v106_v6  ;;  %s407_s3 = sld [smem:[#allocation2 + $0x28]]  ;;  %v159_v35 = vstv %s542_s25 }
  0x38   :  { %v142_v30 = vadd.f32 %v141_v21, %v139_v25  ;;  %v162_v31 = vstv %s402_s26  ;;  %s408_s4 = sld [smem:[#allocation2 + $0x29]]  ;;  %v553_v38 = vmax.f32 %v124_v24, 0.0 }
  0x39   :  { %v153_v32 = vadd.f32 %v152_v26, %v149_v28  ;;  %v163_v33 = vmul.f32 %v162_v31, %v524_v46  ;;  %v165_v34 = vstv %s403_s27  ;;  %s409_s1 = sld [smem:[#allocation2 + $0x2a]] }
  0x3a   :  { %v166_v36 = vmul.f32 %v165_v34, %v529_v50  ;;  %v169_v37 = vstv %s404_s28  ;;  %s555_s5 = sld [smem:[#allocation2 + $0x2b]]  ;;  %v557_v42 = vmax.f32 %v142_v30, 0.0 }
  0x3b   :  { %v157_v39 = vadd.f32 %v156_v29, %v153_v32  ;;  %v170_v40 = vmul.f32 %v169_v37, %v105_v59  ;;  %v173_v41 = vstv %s405_s29  ;;  %s559_s6 = sld [smem:[#allocation2 + $0x2c]] }
  0x3c   :  { %v167_v43 = vadd.f32 %v166_v36, %v163_v33  ;;  %v174_v44 = vmul.f32 %v173_v41, %v106_v6  ;;  %s412_s7 = sld [smem:[#allocation2 + $0x2d]]  ;;  %v177_v50 = vstv %s548_s30 }
  0x3d   :  { %v160_v45 = vadd.f32 %v159_v35, %v157_v39  ;;  %v184_v46 = vstv %s407_s3  ;;  %s413_s8 = sld [smem:[#allocation2 + $0x2e]] }
  0x3e   :  { %v171_v47 = vadd.f32 %v170_v40, %v167_v43  ;;  %v185_v48 = vmul.f32 %v184_v46, %v553_v38  ;;  %v187_v49 = vstv %s408_s4  ;;  %s414_s9 = sld [smem:[#allocation2 + $0x2f]] }
  0x3f   :  { %v181_v51 = vmax.f32 %v160_v45, 0.0  ;;  %v188_v52 = vmul.f32 %v187_v49, %v557_v42  ;;  %v191_v53 = vstv %s409_s1  ;;  %s415_s10 = sld [smem:[#allocation2 + $0x30]] }
  0x40   :  { %v175_v54 = vadd.f32 %v174_v44, %v171_v47  ;;  %s564_s11 = sld [smem:[#allocation2 + $0x31]]  ;;  %v195_v59 = vstv %s555_s5 }
  0x41   :  { %v189_v55 = vadd.f32 %v188_v52, %v185_v48  ;;  %v192_v56 = vmul.f32 %v191_v53, %v181_v51  ;;  %s417_s12 = sld [smem:[#allocation2 + $0x32]]  ;;  %v199_v7 = vstv %s559_s6 }
  0x42   :  { %v178_v57 = vadd.f32 %v177_v50, %v175_v54  ;;  %v202_v58 = vstv %s412_s7  ;;  %s418_s13 = sld [smem:[#allocation2 + $0x33]] }
  0x43   :  { %v203_v60 = vmul.f32 %v202_v58, %v553_v38  ;;  %v205_v61 = vstv %s413_s8  ;;  %s419_s14 = sld [smem:[#allocation2 + $0x34]]  ;;  %v193_v63 = vadd.f32 %v192_v56, %v189_v55 }
  0x44   :  { %v182_v62 = vmax.f32 %v178_v57, 0.0  ;;  %v206_v0 = vmul.f32 %v205_v61, %v557_v42  ;;  %v209_v1 = vstv %s414_s9  ;;  %s420_s15 = sld [smem:[#allocation2 + $0x35]] }
  0x45   :  { %v210_v2 = vmul.f32 %v209_v1, %v181_v51  ;;  %v213_v3 = vstv %s415_s10  ;;  %s569_s16 = sld [smem:[#allocation2 + $0x36]] }
  0x46   :  { %v196_v4 = vmul.f32 %v195_v59, %v182_v62  ;;  %v207_v5 = vadd.f32 %v206_v0, %v203_v60  ;;  %v214_v6 = vmul.f32 %v213_v3, %v182_v62  ;;  %s422_s17 = sld [smem:[#allocation2 + $0x37]]  ;;  %v217_v13 = vstv %s564_s11 }
  0x47   :  { %v220_v8 = vstv %s417_s12  ;;  %s423_s18 = sld [smem:[#allocation2 + $0x38]] }
  0x48   :  { %v197_v9 = vadd.f32 %v196_v4, %v193_v63  ;;  %v211_v10 = vadd.f32 %v210_v2, %v207_v5  ;;  %v221_v11 = vmul.f32 %v220_v8, %v553_v38  ;;  %v223_v12 = vstv %s418_s13  ;;  %s424_s19 = sld [smem:[#allocation2 + $0x39]] }
  0x49   :  { %v224_v14 = vmul.f32 %v223_v12, %v557_v42  ;;  %v227_v15 = vstv %s419_s14  ;;  %s425_s0 = sld [smem:[#allocation2 + $0x3a]] }
  0x4a   :  { %v200_v16 = vadd.f32 %v199_v7, %v197_v9  ;;  %v215_v17 = vadd.f32 %v214_v6, %v211_v10  ;;  %v228_v18 = vmul.f32 %v227_v15, %v181_v51  ;;  %v231_v19 = vstv %s420_s15  ;;  %s575_s20 = sld [smem:[#allocation2 + $0x3b]] }
  0x4b   :  { %v225_v20 = vadd.f32 %v224_v14, %v221_v11  ;;  %v232_v21 = vmul.f32 %v231_v19, %v182_v62  ;;  %s427_s21 = sld [smem:[#allocation2 + $0x3c]]  ;;  %v235_v27 = vstv %s569_s16 }
  0x4c   :  { %v218_v22 = vadd.f32 %v217_v13, %v215_v17  ;;  %v238_v23 = vstv %s422_s17  ;;  %s428_s22 = sld [smem:[#allocation2 + $0x3d]]  ;;  %v580_v30 = vmax.f32 %v200_v16, 0.0 }
  0x4d   :  { %v229_v24 = vadd.f32 %v228_v18, %v225_v20  ;;  %v239_v25 = vmul.f32 %v238_v23, %v553_v38  ;;  %v241_v26 = vstv %s423_s18  ;;  %s429_s23 = sld [smem:[#allocation2 + $0x3e]] }
  0x4e   :  { %v242_v28 = vmul.f32 %v241_v26, %v557_v42  ;;  %v245_v29 = vstv %s424_s19  ;;  %s582_s24 = sld [smem:[#allocation2 + $0x3f]]  ;;  %v584_v34 = vmax.f32 %v218_v22, 0.0 }
  0x4f   :  { %v233_v31 = vadd.f32 %v232_v21, %v229_v24  ;;  %v246_v32 = vmul.f32 %v245_v29, %v181_v51  ;;  %v249_v33 = vstv %s425_s0  ;;  %s586_s25 = sld [smem:[#allocation2 + $0x40]] }
  0x50   :  { %v243_v35 = vadd.f32 %v242_v28, %v239_v25  ;;  %v250_v36 = vmul.f32 %v249_v33, %v182_v62  ;;  %s432_s26 = sld [smem:[#allocation2 + $0x41]]  ;;  %v253_v42 = vstv %s575_s20 }
  0x51   :  { %v236_v37 = vadd.f32 %v235_v27, %v233_v31  ;;  %v260_v38 = vstv %s427_s21  ;;  %s433_s27 = sld [smem:[#allocation2 + $0x42]] }
  0x52   :  { %v247_v39 = vadd.f32 %v246_v32, %v243_v35  ;;  %v261_v40 = vmul.f32 %v260_v38, %v580_v30  ;;  %v263_v41 = vstv %s428_s22  ;;  %s434_s28 = sld [smem:[#allocation2 + $0x43]] }
  0x53   :  { %v257_v43 = vmax.f32 %v236_v37, 0.0  ;;  %v264_v44 = vmul.f32 %v263_v41, %v584_v34  ;;  %v267_v45 = vstv %s429_s23  ;;  %s435_s29 = sld [smem:[#allocation2 + $0x44]] }
  0x54   :  { %v251_v46 = vadd.f32 %v250_v36, %v247_v39  ;;  %s591_s30 = sld [smem:[#allocation2 + $0x45]]  ;;  %v271_v51 = vstv %s582_s24 }
  0x55   :  { %v265_v47 = vadd.f32 %v264_v44, %v261_v40  ;;  %v268_v48 = vmul.f32 %v267_v45, %v257_v43  ;;  %s437_s3 = sld [smem:[#allocation2 + $0x46]]  ;;  %v275_v63 = vstv %s586_s25 }
  0x56   :  { %v254_v49 = vadd.f32 %v253_v42, %v251_v46  ;;  %v278_v50 = vstv %s432_s26  ;;  %s438_s4 = sld [smem:[#allocation2 + $0x47]] }
  0x57   :  { %v279_v52 = vmul.f32 %v278_v50, %v580_v30  ;;  %v281_v53 = vstv %s433_s27  ;;  %s439_s1 = sld [smem:[#allocation2 + $0x48]]  ;;  %v269_v55 = vadd.f32 %v268_v48, %v265_v47 }
  0x58   :  { %v258_v54 = vmax.f32 %v254_v49, 0.0  ;;  %v282_v56 = vmul.f32 %v281_v53, %v584_v34  ;;  %v285_v57 = vstv %s434_s28  ;;  %s440_s5 = sld [smem:[#allocation2 + $0x49]] }
  0x59   :  { %v286_v58 = vmul.f32 %v285_v57, %v257_v43  ;;  %v289_v59 = vstv %s435_s29  ;;  %s596_s6 = sld [smem:[#allocation2 + $0x4a]] }
  0x5a   :  { %v272_v60 = vmul.f32 %v271_v51, %v258_v54  ;;  %v283_v61 = vadd.f32 %v282_v56, %v279_v52  ;;  %v290_v62 = vmul.f32 %v289_v59, %v258_v54  ;;  %s442_s7 = sld [smem:[#allocation2 + $0x4b]]  ;;  %v293_v5 = vstv %s591_s30 }
  0x5b   :  { %v296_v0 = vstv %s437_s3  ;;  %s443_s8 = sld [smem:[#allocation2 + $0x4c]] }
  0x5c   :  { %v273_v1 = vadd.f32 %v272_v60, %v269_v55  ;;  %v287_v2 = vadd.f32 %v286_v58, %v283_v61  ;;  %v297_v3 = vmul.f32 %v296_v0, %v580_v30  ;;  %v299_v4 = vstv %s438_s4  ;;  %s444_s9 = sld [smem:[#allocation2 + $0x4d]] }
  0x5d   :  { %v300_v6 = vmul.f32 %v299_v4, %v584_v34  ;;  %v303_v7 = vstv %s439_s1  ;;  %s445_s10 = sld [smem:[#allocation2 + $0x4e]] }
  0x5e   :  { %v276_v8 = vadd.f32 %v275_v63, %v273_v1  ;;  %v291_v9 = vadd.f32 %v290_v62, %v287_v2  ;;  %v304_v10 = vmul.f32 %v303_v7, %v257_v43  ;;  %v307_v11 = vstv %s440_s5  ;;  %s602_s11 = sld [smem:[#allocation2 + $0x4f]] }
  0x5f   :  { %v301_v12 = vadd.f32 %v300_v6, %v297_v3  ;;  %v308_v13 = vmul.f32 %v307_v11, %v258_v54  ;;  %s447_s12 = sld [smem:[#allocation2 + $0x50]]  ;;  %v311_v19 = vstv %s596_s6 }
  0x60   :  { %v294_v14 = vadd.f32 %v293_v5, %v291_v9  ;;  %v314_v15 = vstv %s442_s7  ;;  %s448_s13 = sld [smem:[#allocation2 + $0x51]]  ;;  %v331_v22 = vmax.f32 %v276_v8, 0.0 }
  0x61   :  { %v305_v16 = vadd.f32 %v304_v10, %v301_v12  ;;  %v315_v17 = vmul.f32 %v314_v15, %v580_v30  ;;  %v317_v18 = vstv %s443_s8  ;;  %s449_s14 = sld [smem:[#allocation2 + $0x52]] }
  0x62   :  { %v318_v20 = vmul.f32 %v317_v18, %v584_v34  ;;  %v321_v21 = vstv %s444_s9  ;;  %v332_v26 = vmax.f32 %v294_v14, 0.0  ;;  %s450_s15 = sld [smem:[#allocation2 + $0x53]] }
  0x63   :  { %v309_v23 = vadd.f32 %v308_v13, %v305_v16  ;;  %v322_v24 = vmul.f32 %v321_v21, %v257_v43  ;;  %v325_v25 = vstv %s445_s10  ;;  %s451_s16 = sld [smem:[#allocation2 + $0x54]] }
  0x64   :  { %v319_v27 = vadd.f32 %v318_v20, %v315_v17  ;;  %v326_v28 = vmul.f32 %v325_v25, %v258_v54  ;;  %v329_v35 = vstv %s602_s11 }
  0x65   :  { %v312_v29 = vadd.f32 %v311_v19, %v309_v23  ;;  %v336_v31 = vstv %s447_s12 }
  0x66   :  { %v323_v32 = vadd.f32 %v322_v24, %v319_v27  ;;  %v337_v33 = vmul.f32 %v336_v31, %v331_v22  ;;  %v339_v30 = vstv %s448_s13 }
  0x67   :  { %v333_v36 = vmax.f32 %v312_v29, 0.0  ;;  %v340_v37 = vmul.f32 %v339_v30, %v332_v26  ;;  %v343_v38 = vstv %s449_s14 }
  0x68   :  { %v327_v34 = vadd.f32 %v326_v28, %v323_v32  ;;  %v347_v42 = vstv %s450_s15 }
  0x69   :  { %v341_v39 = vadd.f32 %v340_v37, %v337_v33  ;;  %v344_v40 = vmul.f32 %v343_v38, %v333_v36  ;;  %v351_v46 = vstv %s451_s16 }
  0x6a   :  { %v330_v41 = vadd.f32 %v329_v35, %v327_v34 }
  0x6b   :  { %v345_v44 = vadd.f32 %v344_v40, %v341_v39 }
  0x6c   :  { %v334_v43 = vmax.f32 %v330_v41, 0.0 }
  0x6e   :  { %v348_v45 = vmul.f32 %v347_v42, %v334_v43 }
  0x70   :  { %v349_v47 = vadd.f32 %v348_v45, %v345_v44 }
  0x72   :  { %v352_v48 = vadd.f32 %v351_v46, %v349_v47 }
  0x74   :  { %v452_v49 = vmul.f32 -1.442695, %v352_v48 }
  0x76   :  { %454 = vpow2.f32 %v452_v49 }
  0x83   :  { %v455_v50 = vpop.eup %454 }
  0x84   :  { %v356_v51 = vadd.f32 1.0, %v455_v50 }
  0x86   :  { %456 = vrcp.f32 %v356_v51 }
  0x93   :  { %v457_v52 = vpop.eup %456 }
  0x94   :  { %359 = vst [vmem:[%s613_s2] sm:$0x1] %v457_v52 }
  0x95   :  { %364 = vsyncpa [#allocation3], 1 }

</bundles_post_ra>
